<compile_context>
chip_gen: v7x
topology: tpu7x:2x2x1
jax: 0.10.0
libtpu: 0.0.40
codegen_flags: <defaults>
</compile_context>

<pallas_src>
import functools

import jax
import jax.numpy as jnp
from jax.experimental import pallas as pl
from jax.experimental.pallas import tpu as pltpu


def gcn_block_kernel(w_ref, x_ref, m_ref, wk_ref, b_ref, o_ref, *, inv_c):
    # w_ref:  (TB, C*N)  attention logits, tiled C times along the lane dim
    # x_ref:  (TB, C*N)  node features, flat index f = c*N + n
    # m_ref:  (C*N, C*N) kron(I_C, 1_{NxN})     -> per-channel node sum
    # wk_ref: (C*N, C*N) kron(W_eff^T, I_N)     -> folded 1x1 conv + BN
    # b_ref:  (1,  C*N)  folded bias, pre-broadcast over nodes
    # o_ref:  (TB, C*N)
    hp = jax.lax.Precision.HIGHEST
    x = x_ref[...]                                       # (TB, CN)

    # attention(w): relu(tanh(w)); A = wa wa^T + I is never materialized.
    wa = jnp.maximum(jnp.tanh(w_ref[...]), 0.0)          # (TB, CN), tiled
    # lane reduction over the tiled row gives C * Σ_n wa_n
    s_wa = jnp.sum(wa, axis=1, keepdims=True) * inv_c    # (TB, 1)
    deg = wa * s_wa + 1.0                                # (TB, CN)
    inv_deg = pl.reciprocal(deg, approx=False)           # exact; == d*d
    d = jax.lax.rsqrt(deg)
    coef = wa * d                                        # (TB, CN)

    # Rank-1 action of L on the node axis, kept fully lane-dense:
    #   sx[b, c*N+m] = Σ_n coef[b,n] * x[b,c,n]   (replicated across m)
    z = coef * x
    sx = jnp.dot(z, m_ref[...], preferred_element_type=jnp.float32,
                 precision=hp)                           # (TB, CN)
    agg = coef * sx + inv_deg * x                        # (TB, CN)

    # 1x1 conv + folded eval-mode BatchNorm + ReLU, one contraction for the
    # whole block, one lane-dense store.
    y = jnp.dot(agg, wk_ref[...], preferred_element_type=jnp.float32,
                precision=hp) + b_ref[...]
    o_ref[...] = jnp.maximum(y, 0.0)


def _default_batch_block(B, CN):
    """Whole-batch default, capped so the working set stays far below v7x's
    64 MiB VMEM (conservative 8 MiB budget, double-buffered blocks)."""
    budget = 8 * 1024 * 1024
    const_bytes = 2 * (2 * CN * CN + CN) * 4          # M, W_kron, bias (x2 buf)
    row_bytes = 2 * 3 * CN * 4                        # w, x, out rows (x2 buf)
    max_rows = max(1, (budget - const_bytes) // row_bytes)
    if B <= max_rows:
        return B
    return max(8, (max_rows // 8) * 8)                # keep (8,128) constraint


def gcn_block_forward(x_nchw, w, conv_w, conv_b, bn_gamma, bn_beta,
                      bn_mean, bn_var, eps=1e-5, batch_block=None):
    """x_nchw: (B, C, N, 1) float32, w: (B, N) float32 -> (B, C, N, 1).

    batch_block: rows per grid step.  Default = whole batch (one grid step;
    best at small sizes — splitting for megacore only pays once per-core work
    exceeds the ~0.35 µs per-step overhead).  If supplied and != B it must be
    a multiple of 8 that divides B.
    """
    B, C, N, _ = x_nchw.shape
    CN = C * N

    # Free, contiguous reinterpretations in HBM (no transposes).
    x_flat = x_nchw.reshape(B, CN).astype(jnp.float32)
    # Elementwise ops commute with tiling, so pre-tile w along the lane dim.
    w_tiled = jnp.tile(w.astype(jnp.float32), (1, C))            # (B, CN)

    # Fold 1x1 conv + eval-mode BatchNorm2d into a single affine.
    # TODO(synk): BatchNorm2d is folded with running statistics (eval mode);
    # training-mode batch statistics would need a cross-batch reduction.
    scale = bn_gamma / jnp.sqrt(bn_var + eps)                    # (C,)
    wct = conv_w.reshape(C, C) * scale[:, None]                  # (C_out, C_in)
    bias = scale * (conv_b - bn_mean) + bn_beta                  # (C,)

    # Structural matrices for the lane-dense formulation.
    # NOTE: these are (C*N, C*N); fine while C*N is O(hundreds).  For much
    # larger graphs switch back to the unflattened (B, C, N) formulation.
    eye_n = jnp.eye(N, dtype=jnp.float32)
    m_block = jnp.kron(jnp.eye(C, dtype=jnp.float32),
                       jnp.ones((N, N), jnp.float32))            # (CN, CN)
    w_kron = jnp.kron(wct.T.astype(jnp.float32), eye_n)          # (CN, CN)
    bias_flat = jnp.repeat(bias.astype(jnp.float32), N).reshape(1, CN)

    if batch_block is None:
        batch_block = _default_batch_block(B, CN)
    batch_block = min(batch_block, B)
    if batch_block != B:
        assert batch_block % 8 == 0 and B % batch_block == 0, (
            "batch_block must equal B, or be a multiple of 8 dividing B "
            "(keeps (8,128) tiling and avoids padded tail blocks)")
    grid_b = pl.cdiv(B, batch_block)
    # Note: all in-kernel math is row-independent (elementwise + lane-dim
    # contractions), so even a padded tail block could never contaminate
    # valid rows — padded rows are simply never written back.

    kernel = functools.partial(gcn_block_kernel, inv_c=1.0 / C)

    out_flat = pl.pallas_call(
        kernel,
        out_shape=jax.ShapeDtypeStruct((B, CN), jnp.float32),
        grid_spec=pltpu.PrefetchScalarGridSpec(
            num_scalar_prefetch=0,
            grid=(grid_b,),
            in_specs=[
                pl.BlockSpec((batch_block, CN), lambda b: (b, 0)),
                pl.BlockSpec((batch_block, CN), lambda b: (b, 0)),
                pl.BlockSpec((CN, CN), lambda b: (0, 0)),
                pl.BlockSpec((CN, CN), lambda b: (0, 0)),
                pl.BlockSpec((1, CN), lambda b: (0, 0)),
            ],
            out_specs=pl.BlockSpec((batch_block, CN), lambda b: (b, 0)),
        ),
        compiler_params=pltpu.CompilerParams(
            dimension_semantics=("parallel",),
            vmem_limit_bytes=32 * 1024 * 1024,
        ),
    )(w_tiled, x_flat, m_block, w_kron, bias_flat)

    return out_flat.reshape(B, C, N, 1)


def gcn_block_ref(x_nchw, w, conv_w, conv_b, bn_gamma, bn_beta,
                  bn_mean, bn_var, eps=1e-5):
    """Pure-JAX reference mirroring the PyTorch forward (eval-mode BN)."""
    hp = jax.lax.Precision.HIGHEST
    B, C, N, _ = x_nchw.shape
    wa = jnp.maximum(jnp.tanh(w), 0.0)[..., None]                   # (B, N, 1)
    A = jnp.matmul(wa, jnp.transpose(wa, (0, 2, 1)), precision=hp)
    A = A + jnp.eye(N, dtype=x_nchw.dtype)[None]
    D_out = jnp.sum(A, axis=-1)
    D = (1.0 / D_out) ** 0.5
    Dm = jax.vmap(jnp.diag)(D)
    L = jnp.matmul(jnp.matmul(Dm, A, precision=hp), Dm, precision=hp)
    out = jnp.transpose(x_nchw[..., 0], (0, 2, 1))                  # (B, N, C)
    out = jnp.matmul(L, out, precision=hp)
    out = jnp.transpose(out, (0, 2, 1))[..., None]                  # (B, C, N, 1)
    y = (jnp.einsum('oc,bcnh->bonh', conv_w.reshape(C, C), out, precision=hp)
         + conv_b[None, :, None, None])
    y = (bn_gamma[None, :, None, None] * (y - bn_mean[None, :, None, None])
         / jnp.sqrt(bn_var[None, :, None, None] + eps)
         + bn_beta[None, :, None, None])
    return jnp.maximum(y, 0.0)


if __name__ == "__main__":
    def run_case(B, C, N, key, batch_block=None):
        ks = jax.random.split(key, 8)
        x = jax.random.normal(ks[0], (B, C, N, 1), dtype=jnp.float32)     # NCHW
        w = jax.random.normal(ks[1], (B, N), dtype=jnp.float32)           # logits
        conv_w = 0.2 * jax.random.normal(ks[2], (C, C, 1, 1), dtype=jnp.float32)
        conv_b = 0.1 * jax.random.normal(ks[3], (C,), dtype=jnp.float32)
        bn_gamma = 1.0 + 0.1 * jax.random.normal(ks[4], (C,), dtype=jnp.float32)
        bn_beta = 0.05 * jax.random.normal(ks[5], (C,), dtype=jnp.float32)
        bn_mean = 0.1 * jax.random.normal(ks[6], (C,), dtype=jnp.float32)
        bn_var = jax.random.uniform(ks[7], (C,), minval=0.5, maxval=1.5,
                                    dtype=jnp.float32)

        out = gcn_block_forward(x, w, conv_w, conv_b, bn_gamma, bn_beta,
                                bn_mean, bn_var, batch_block=batch_block)
        out = jax.block_until_ready(out)
        ref = gcn_block_ref(x, w, conv_w, conv_b, bn_gamma, bn_beta,
                            bn_mean, bn_var)
        assert out.shape == (B, C, N, 1)
        err = jnp.max(jnp.abs(out - ref))
        assert jnp.allclose(out, ref, rtol=1e-4, atol=1e-4), \
            f"max abs err {err}"

    key = jax.random.PRNGKey(0)
    k1, k2 = jax.random.split(key)

    # Original sizes: whole batch in a single grid step (grid=(1,)).
    run_case(2, 8, 16, k1)

    # Larger batch per call (amortizes launch overhead) with an explicit
    # batch_block exercising the multi-step "parallel" batch axis.
    run_case(16, 8, 16, k2, batch_block=8)

    print("KERNEL_OK")
</pallas_src>

<mosaic_0001>
module attributes {stable_mosaic.version = 11 : i64} {
  func.func @gcn_block_kernel(%arg0: i32, %arg1: memref<2x128xf32, #tpu.memory_space<vmem>>, %arg2: memref<2x128xf32, #tpu.memory_space<vmem>>, %arg3: memref<128x128xf32, #tpu.memory_space<vmem>>, %arg4: memref<128x128xf32, #tpu.memory_space<vmem>>, %arg5: memref<1x128xf32, #tpu.memory_space<vmem>>, %arg6: memref<2x128xf32, #tpu.memory_space<vmem>>) attributes {dimension_semantics = [#tpu.dimension_semantics<parallel>], iteration_bounds = array<i64: 1>, scalar_prefetch = 0 : i64, scratch_operands = 0 : i64, tpu.core_type = #tpu.core_type<tc>, window_params = [{transform_indices = @transform_0, window_bounds = array<i64: 2, 128>}, {transform_indices = @transform_1, window_bounds = array<i64: 2, 128>}, {pipeline_mode = #tpu.pipeline_mode<synchronous>, transform_indices = @transform_2, window_bounds = array<i64: 128, 128>}, {pipeline_mode = #tpu.pipeline_mode<synchronous>, transform_indices = @transform_3, window_bounds = array<i64: 128, 128>}, {pipeline_mode = #tpu.pipeline_mode<synchronous>, transform_indices = @transform_4, window_bounds = array<i64: 1, 128>}, {transform_indices = @transform_5, window_bounds = array<i64: 2, 128>}]} {
    %c0 = arith.constant 0 : index
    %c0_0 = arith.constant 0 : index
    %0 = vector.load %arg2[%c0, %c0_0] : memref<2x128xf32, #tpu.memory_space<vmem>>, vector<2x128xf32>
    %c0_1 = arith.constant 0 : index
    %c0_2 = arith.constant 0 : index
    %1 = vector.load %arg1[%c0_1, %c0_2] : memref<2x128xf32, #tpu.memory_space<vmem>>, vector<2x128xf32>
    %2 = math.tanh %1 : vector<2x128xf32>
    %cst = arith.constant 0.000000e+00 : f32
    %3 = vector.broadcast %cst : f32 to vector<2x128xf32>
    %4 = arith.maximumf %2, %3 : vector<2x128xf32>
    %cst_3 = arith.constant dense<0.000000e+00> : vector<2xf32>
    %5 = vector.multi_reduction <add>, %4, %cst_3 [1] : vector<2x128xf32> to vector<2xf32>
    %6 = vector.shape_cast %5 : vector<2xf32> to vector<2x1xf32>
    %cst_4 = arith.constant 1.250000e-01 : f32
    %7 = vector.broadcast %cst_4 : f32 to vector<2x1xf32>
    %8 = arith.mulf %6, %7 : vector<2x1xf32>
    %9 = vector.broadcast %8 : vector<2x1xf32> to vector<2x128xf32>
    %10 = arith.mulf %4, %9 : vector<2x128xf32>
    %cst_5 = arith.constant 1.000000e+00 : f32
    %11 = vector.broadcast %cst_5 : f32 to vector<2x128xf32>
    %12 = arith.addf %10, %11 : vector<2x128xf32>
    %13 = tpu.reciprocal %12 : vector<2x128xf32> -> vector<2x128xf32>
    %14 = math.rsqrt %12 : vector<2x128xf32>
    %15 = arith.mulf %4, %14 : vector<2x128xf32>
    %16 = arith.mulf %15, %0 : vector<2x128xf32>
    %c0_6 = arith.constant 0 : index
    %c0_7 = arith.constant 0 : index
    %17 = vector.load %arg3[%c0_6, %c0_7] : memref<128x128xf32, #tpu.memory_space<vmem>>, vector<128x128xf32>
    %cst_8 = arith.constant dense<0.000000e+00> : vector<2x128xf32>
    %18 = tpu.matmul %16, %17, %cst_8 {dimension_numbers = #tpu.dot_dimension_numbers<[1], [0], [0], [1], [0, 0, 1, 1], [], []>, precision = #tpu.contract_precision<fp32>} : vector<2x128xf32>, vector<128x128xf32>, vector<2x128xf32> -> vector<2x128xf32>
    %19 = arith.mulf %15, %18 : vector<2x128xf32>
    %20 = arith.mulf %13, %0 : vector<2x128xf32>
    %21 = arith.addf %19, %20 : vector<2x128xf32>
    %c0_9 = arith.constant 0 : index
    %c0_10 = arith.constant 0 : index
    %22 = vector.load %arg4[%c0_9, %c0_10] : memref<128x128xf32, #tpu.memory_space<vmem>>, vector<128x128xf32>
    %cst_11 = arith.constant dense<0.000000e+00> : vector<2x128xf32>
    %23 = tpu.matmul %21, %22, %cst_11 {dimension_numbers = #tpu.dot_dimension_numbers<[1], [0], [0], [1], [0, 0, 1, 1], [], []>, precision = #tpu.contract_precision<fp32>} : vector<2x128xf32>, vector<128x128xf32>, vector<2x128xf32> -> vector<2x128xf32>
    %c0_12 = arith.constant 0 : index
    %c0_13 = arith.constant 0 : index
    %24 = vector.load %arg5[%c0_12, %c0_13] : memref<1x128xf32, #tpu.memory_space<vmem>>, vector<1x128xf32>
    %25 = vector.broadcast %24 : vector<1x128xf32> to vector<2x128xf32>
    %26 = arith.addf %23, %25 : vector<2x128xf32>
    %cst_14 = arith.constant 0.000000e+00 : f32
    %27 = vector.broadcast %cst_14 : f32 to vector<2x128xf32>
    %28 = arith.maximumf %26, %27 : vector<2x128xf32>
    %c0_15 = arith.constant 0 : index
    %c0_16 = arith.constant 0 : index
    %29 = vector.load %arg6[%c0_15, %c0_16] : memref<2x128xf32, #tpu.memory_space<vmem>>, vector<2x128xf32>
    tpu.vector_store %arg6[%c0_15, %c0_16], %28 {strides = array<i32>} : memref<2x128xf32, #tpu.memory_space<vmem>>, vector<2x128xf32>,
    return
  }
  func.func @transform_0(%arg0: i32) -> (i32, i32) {
    %c0_i32 = arith.constant 0 : i32
    %c0_i32_0 = arith.constant 0 : i32
    return %arg0, %c0_i32 : i32, i32
  }
  func.func @transform_1(%arg0: i32) -> (i32, i32) {
    %c0_i32 = arith.constant 0 : i32
    %c0_i32_0 = arith.constant 0 : i32
    return %arg0, %c0_i32 : i32, i32
  }
  func.func @transform_2(%arg0: i32) -> (i32, i32) {
    %c0_i32 = arith.constant 0 : i32
    %c0_i32_0 = arith.constant 0 : i32
    %c0_i32_1 = arith.constant 0 : i32
    return %c0_i32, %c0_i32_0 : i32, i32
  }
  func.func @transform_3(%arg0: i32) -> (i32, i32) {
    %c0_i32 = arith.constant 0 : i32
    %c0_i32_0 = arith.constant 0 : i32
    %c0_i32_1 = arith.constant 0 : i32
    return %c0_i32, %c0_i32_0 : i32, i32
  }
  func.func @transform_4(%arg0: i32) -> (i32, i32) {
    %c0_i32 = arith.constant 0 : i32
    %c0_i32_0 = arith.constant 0 : i32
    %c0_i32_1 = arith.constant 0 : i32
    return %c0_i32, %c0_i32_0 : i32, i32
  }
  func.func @transform_5(%arg0: i32) -> (i32, i32) {
    %c0_i32 = arith.constant 0 : i32
    %c0_i32_0 = arith.constant 0 : i32
    return %arg0, %c0_i32 : i32, i32
  }
}

</mosaic_0001>

<bundles_post_ra>
// kernel: tpu_custom_call.1
= control target key start
LH: loop header
LB: loop body
LE: loop exit
PB: predicated region body
PF: predicated region fallthrough
CT: control target
= control target key end

     0   :  { %10 = vsyncpa [#allocation3], 0  ;;  %s3113_s0 = inlined_call_operand.hbm [shape: f32[2,128], index: 0, kind: input, shape index: {}]   ;;  %s3114_s1 = inlined_call_operand.vmem [shape: f32[2,128], index: 1, kind: input, shape index: {}]   ;;  %s3115_s2 = inlined_call_operand.hbm [shape: f32[128,128], index: 2, kind: input, shape index: {}]   ;;  %s3116_s3 = inlined_call_operand.hbm [shape: f32[128,128], index: 3, kind: input, shape index: {}]   ;;  %s3117_s4 = inlined_call_operand.vmem [shape: f32[1,128], index: 4, kind: input, shape index: {}]   ;;  %s3118_s5 = inlined_call_operand.hbm [shape: f32[2,128], index: 5, kind: output, shape index: {}]  }
   0x1   :  { %11 = vsyncpa [#allocation6], 0 }
   0x2   :  { %12 = vsyncpa [#allocation4], 0  ;;  %s2460_s18 = smov [#allocation5]   ;;  %s2366_s22 = scalar_lea.hbm %s3115_s2, 2048 }
   0x3   :  { %s30_s19 = sshll.u32 %s2460_s18, 4  ;;  %p2367_p0 = scmp.ne.s32.totalorder %s3115_s2, %s2366_s22  ;;  %s31_s19 = int_to_ptr.vmem [resolvable:$true] %s30_s19 }
   0x4   :  { %p2370_p1 = scmp.lt.u32.totalorder %s2366_s22, %s3115_s2 }
   0x6   :  { %p2372_p2 = pnand %p2370_p1, %p2367_p0 }
   0x8   :  { %2375 = shalt.err (!%p2372_p2)
}
   0x9   :  { %s2376_s27 = scalar_lea.vmem %s31_s19, 2048  ;;  %p2381_p4 = scmp.lt.s32.totalorder %s31_s19, %s31_s19 }
   0xa   :  { %p2377_p3 = scmp.ne.s32.totalorder %s31_s19, %s2376_s27  ;;  %p2382_p5 = scmp.lt.s32.totalorder %s2376_s27, %s2376_s27 }
   0xc   :  { %p2383_p6 = por %p2382_p5, %p2381_p4 }
   0xe   :  { %p2384_p7 = pnand %p2383_p6, %p2377_p3 }
  0x10   :  { %2387 = shalt.err (!%p2384_p7)
}
  0x11   :  { %s2461_s28 = smov 128   ;;  %s2462_s29 = smov 8  }
  0x12   :  { %36 = dma.hbm_to_vmem [thread:$0]  %s3115_s2, 2048, %s31_s19, [#allocation6], %s2461_s28, %s2461_s28, %s2462_s29  }
  0x13   :  { %s2463_s7 = smov [#allocation2]   ;;  %s2464_s9 = smov [#allocation7]  }
  0x14   :  { %s19_s8 = sshll.u32 %s2463_s7, 4  ;;  %s42_s10 = sshll.u32 %s2464_s9, 4  ;;  %s20_s8 = int_to_ptr.vmem [resolvable:$true] %s19_s8  ;;  %s43_s10 = int_to_ptr.vmem [resolvable:$true] %s42_s10 }
  0x15   :  { %s2388_s13 = scalar_lea.hbm %s3113_s0, 32 }
  0x16   :  { %p2389_p8 = scmp.ne.s32.totalorder %s3113_s0, %s2388_s13  ;;  %p2392_p9 = scmp.lt.u32.totalorder %s2388_s13, %s3113_s0 }
  0x18   :  { %p2394_p10 = pnand %p2392_p9, %p2389_p8 }
  0x1a   :  { %2397 = shalt.err (!%p2394_p10)
}
  0x1b   :  { %s2398_s2 = scalar_lea.vmem %s20_s8, 32  ;;  %p2403_p12 = scmp.lt.s32.totalorder %s20_s8, %s20_s8 }
  0x1c   :  { %p2399_p11 = scmp.ne.s32.totalorder %s20_s8, %s2398_s2  ;;  %p2404_p13 = scmp.lt.s32.totalorder %s2398_s2, %s2398_s2 }
  0x1e   :  { %p2405_p0 = por %p2404_p13, %p2403_p12 }
  0x20   :  { %p2406_p1 = pnand %p2405_p0, %p2399_p11 }
  0x22   :  { %2409 = shalt.err (!%p2406_p1)
}
  0x23   :  { %22 = dma.hbm_to_vmem [thread:$0]  %s3113_s0, 32, %s20_s8, [#allocation3]  }
  0x24   :  { %s2410_s22 = scalar_lea.hbm %s3116_s3, 2048 }
  0x25   :  { %p2411_p2 = scmp.ne.s32.totalorder %s3116_s3, %s2410_s22  ;;  %p2414_p3 = scmp.lt.u32.totalorder %s2410_s22, %s3116_s3 }
  0x27   :  { %p2416_p4 = pnand %p2414_p3, %p2411_p2 }
  0x29   :  { %2419 = shalt.err (!%p2416_p4)
}
  0x2a   :  { %s2420_s27 = scalar_lea.vmem %s43_s10, 2048  ;;  %p2425_p6 = scmp.lt.s32.totalorder %s43_s10, %s43_s10 }
  0x2b   :  { %p2421_p5 = scmp.ne.s32.totalorder %s43_s10, %s2420_s27  ;;  %p2426_p7 = scmp.lt.s32.totalorder %s2420_s27, %s2420_s27 }
  0x2d   :  { %p2427_p8 = por %p2426_p7, %p2425_p6 }
  0x2f   :  { %p2428_p9 = pnand %p2427_p8, %p2421_p5 }
  0x31   :  { %2431 = shalt.err (!%p2428_p9)
}
  0x32   :  { %48 = dma.hbm_to_vmem [thread:$0]  %s3116_s3, 2048, %s43_s10, [#allocation6], %s2461_s28, %s2461_s28, %s2462_s29  }
  0x33   :  { %2454 = dma.done.wait [#allocation3], 32  }
  0x34   :  { %2455 = vsyncadd [#allocation3], 4294967264 }
  0x35   :  { %2456 = dma.done.wait [#allocation6], 4096  }
  0x36   :  { %2457 = vsyncadd [#allocation6], 4294963200  ;;  %v2465_v0 = vmov 0.0|0.0   ;;  %v61_v1 = vld [vmem:[#allocation2] sm:$0x3]  ;;  %vm64_vm0 = vcmask 1041408  }
  0x37   :  { %2042 = vmatprep.subr.bf16.mxu0 %v2465_v0  ;;  %2186 = vmatprep.subr.bf16.mxu1 %v2465_v0  ;;  %2360 = vtanh.f32 %v61_v1  ;;  %v75_v5 = vld [vmem:[#allocation5] sm:$0xff]  ;;  %v76_v6 = vld [vmem:[#allocation5 + $0x8] sm:$0xff]  ;;  %v77_v10 = vld [vmem:[#allocation5 + $0x10] sm:$0xff]  ;;  %vm2466_vm1 = vmmov 0   ;;  %v2467_v56 = vmov 0.0   ;;  %s2468_s6 = smov [#allocation8]  }
  0x38   :  { %v92_v7 = vand.u32 4294901760, %v75_v5  ;;  %v95_v8 = vand.u32 4294901760, %v76_v6  ;;  %v78_v11 = vld [vmem:[#allocation5 + $0x18] sm:$0xff]  ;;  %v98_v12 = vand.u32 4294901760, %v77_v10  ;;  %v79_v15 = vld [vmem:[#allocation5 + $0x20] sm:$0xff]  ;;  %v80_v16 = vld [vmem:[#allocation5 + $0x28] sm:$0xff]  ;;  %1654 = vmatprep.mubr.msk.f32.mxu0 %vm2466_vm1, %v2467_v56  ;;  %1864 = vmatprep.mubr.msk.f32.mxu1 %vm2466_vm1, %v2467_v56 }
  0x39   :  { %v101_v13 = vand.u32 4294901760, %v78_v11  ;;  %v104_v17 = vand.u32 4294901760, %v79_v15  ;;  %v107_v18 = vand.u32 4294901760, %v80_v16  ;;  %v81_v24 = vld [vmem:[#allocation5 + $0x30] sm:$0xff]  ;;  %v82_v25 = vld [vmem:[#allocation5 + $0x38] sm:$0xff]  ;;  %v83_v26 = vld [vmem:[#allocation5 + $0x40] sm:$0xff] }
  0x3a   :  { %v2546_v9 = vpack.c.bf16 %v95_v8, %v92_v7  ;;  %v2556_v20 = vsub.f32 %v75_v5, %v92_v7  ;;  %v2558_v21 = vsub.f32 %v76_v6, %v95_v8  ;;  %v2560_v22 = vsub.f32 %v77_v10, %v98_v12  ;;  %v84_v31 = vld [vmem:[#allocation5 + $0x48] sm:$0xff]  ;;  %v85_v32 = vld [vmem:[#allocation5 + $0x50] sm:$0xff]  ;;  %v86_v33 = vld [vmem:[#allocation5 + $0x58] sm:$0xff]  ;;  %s1407_s7 = sshll.u32 %s2468_s6, 4  ;;  %s1408_s7 = int_to_ptr.vmem [resolvable:$true] %s1407_s7 }
  0x3b   :  { %v2550_v14 = vpack.c.bf16 %v101_v13, %v98_v12  ;;  %v2554_v19 = vpack.c.bf16 %v107_v18, %v104_v17  ;;  %v2562_v23 = vsub.f32 %v78_v11, %v101_v13  ;;  %v2565_v27 = vsub.f32 %v79_v15, %v104_v17  ;;  %v87_v38 = vld [vmem:[#allocation5 + $0x60] sm:$0xff]  ;;  %v88_v39 = vld [vmem:[#allocation5 + $0x68] sm:$0xff]  ;;  %v89_v44 = vld [vmem:[#allocation5 + $0x70] sm:$0xff]  ;;  %s2432_s8 = scalar_lea.vmem %s1408_s7, 32  ;;  %p2437_p11 = scmp.lt.s32.totalorder %s1408_s7, %s1408_s7 }
  0x3c   :  { %2044 = vmatpush3.bf16.msra.mxu0 %v2546_v9  ;;  %v2567_v28 = vsub.f32 %v80_v16, %v107_v18  ;;  %v110_v29 = vand.u32 4294901760, %v81_v24  ;;  %v113_v30 = vand.u32 4294901760, %v82_v25  ;;  %v116_v34 = vand.u32 4294901760, %v83_v26  ;;  %v90_v45 = vld [vmem:[#allocation5 + $0x78] sm:$0xff]  ;;  %p2433_p10 = scmp.ne.s32.totalorder %s1408_s7, %s2432_s8  ;;  %p2438_p12 = scmp.lt.s32.totalorder %s2432_s8, %s2432_s8 }
  0x3d   :  { %2045 = vmatprep.subr.bf16.mxu0 %v2465_v0  ;;  %v119_v35 = vand.u32 4294901760, %v84_v31  ;;  %v122_v36 = vand.u32 4294901760, %v85_v32  ;;  %v125_v37 = vand.u32 4294901760, %v86_v33  ;;  %v128_v43 = vand.u32 4294901760, %v87_v38 }
  0x3e   :  { %v2570_v40 = vpack.c.bf16 %v113_v30, %v110_v29  ;;  %v2572_v41 = vsub.f32 %v81_v24, %v110_v29  ;;  %v2574_v42 = vsub.f32 %v82_v25, %v113_v30  ;;  %v2578_v47 = vsub.f32 %v83_v26, %v116_v34  ;;  %p2439_p13 = por %p2438_p12, %p2437_p11 }
  0x3f   :  { %v2576_v46 = vpack.c.bf16 %v119_v35, %v116_v34  ;;  %v2580_v48 = vsub.f32 %v84_v31, %v119_v35  ;;  %v2583_v49 = vsub.f32 %v85_v32, %v122_v36  ;;  %v2585_v50 = vsub.f32 %v86_v33, %v125_v37 }
  0x40   :  { %2047 = vmatpush3.bf16.msra.mxu0 %v2550_v14  ;;  %v131_v51 = vand.u32 4294901760, %v88_v39  ;;  %v2587_v52 = vsub.f32 %v87_v38, %v128_v43  ;;  %v134_v53 = vand.u32 4294901760, %v89_v44  ;;  %v137_v54 = vand.u32 4294901760, %v90_v45  ;;  %p2440_p0 = pnand %p2439_p13, %p2433_p10 }
  0x41   :  { %v2361_v2 = vpop.eup %2360  ;;  %2048 = vmatprep.subr.bf16.mxu0 %v2465_v0  ;;  %v2601_v59 = vpack.c.bf16 %v125_v37, %v122_v36  ;;  %v185_v62 = vand.u32 4294901760, %v2556_v20  ;;  %v192_v63 = vand.u32 4294901760, %v2558_v21  ;;  %v3132_v6 = vand.u32 4294901760, %v2560_v22 }
  0x42   :  { %v2543_v3 = vmax.f32 %v2361_v2, 0.0  ;;  %v2590_v55 = vsub.f32 %v88_v39, %v131_v51  ;;  %v2596_v57 = vsub.f32 %v89_v44, %v134_v53  ;;  %v2598_v58 = vsub.f32 %v90_v45, %v137_v54 }
  0x43   :  { %v2605_v60 = vpack.c.bf16 %v131_v51, %v128_v43  ;;  %v2609_v61 = vpack.c.bf16 %v137_v54, %v134_v53  ;;  %v186_v1 = vsub.f32 %v2556_v20, %v185_v62  ;;  %v193_v2 = vsub.f32 %v2558_v21, %v192_v63 }
  0x44   :  { %v65_v4 = vsel %vm64_vm0, %v2543_v3, 0.0  ;;  %2050 = vmatpush3.bf16.msra.mxu0 %v2554_v19  ;;  %v3131_v7 = vand.u32 4294901760, %v2562_v23  ;;  %v200_v10 = vsub.f32 %v2560_v22, %v3132_v6  ;;  %v3130_v15 = vand.u32 4294901760, %v2565_v27 }
  0x45   :  { %66 = vadd.xlane.f32.xlu0 %v65_v4  ;;  %2051 = vmatprep.subr.bf16.mxu0 %v2465_v0  ;;  %v187_v4 = vand.u32 4294901760, %v186_v1  ;;  %v194_v5 = vand.u32 4294901760, %v193_v2  ;;  %v3129_v16 = vand.u32 4294901760, %v2567_v28  ;;  %v3128_v29 = vand.u32 4294901760, %v2572_v41 }
  0x46   :  { %v207_v11 = vsub.f32 %v2562_v23, %v3131_v7  ;;  %v201_v12 = vand.u32 4294901760, %v200_v10  ;;  %v214_v18 = vsub.f32 %v2565_v27, %v3130_v15  ;;  %v3127_v30 = vand.u32 4294901760, %v2574_v42 }
  0x47   :  { %v2624_v8 = vpack.c.bf16 %v194_v5, %v187_v4  ;;  %v221_v24 = vsub.f32 %v2567_v28, %v3129_v16  ;;  %v228_v32 = vsub.f32 %v2572_v41, %v3128_v29  ;;  %v3126_v36 = vand.u32 4294901760, %v2578_v47  ;;  %v744_v29 = vld [vmem:[#allocation7 + $0x48] sm:$0xff] }
  0x48   :  { %2053 = vmatpush3.bf16.msra.mxu0 %v2570_v40  ;;  %v208_v13 = vand.u32 4294901760, %v207_v11  ;;  %v215_v25 = vand.u32 4294901760, %v214_v18  ;;  %v235_v33 = vsub.f32 %v2574_v42, %v3127_v30  ;;  %v3125_v37 = vand.u32 4294901760, %v2580_v48 }
  0x49   :  { %2054 = vmatprep.subr.bf16.mxu0 %v2465_v0  ;;  %v222_v26 = vand.u32 4294901760, %v221_v24  ;;  %v229_v34 = vand.u32 4294901760, %v228_v32  ;;  %v242_v39 = vsub.f32 %v2578_v47, %v3126_v36  ;;  %v3124_v51 = vand.u32 4294901760, %v2583_v49 }
  0x4a   :  { %v2634_v17 = vpack.c.bf16 %v208_v13, %v201_v12  ;;  %v236_v35 = vand.u32 4294901760, %v235_v33  ;;  %v249_v43 = vsub.f32 %v2580_v48, %v3125_v37  ;;  %v3123_v53 = vand.u32 4294901760, %v2585_v50 }
  0x4b   :  { %v2644_v31 = vpack.c.bf16 %v222_v26, %v215_v25  ;;  %v243_v44 = vand.u32 4294901760, %v242_v39  ;;  %v256_v1 = vsub.f32 %v2583_v49, %v3124_v51  ;;  %v3122_v10 = vand.u32 4294901760, %v2587_v52 }
  0x4c   :  { %2056 = vmatpush3.bf16.msra.mxu0 %v2576_v46  ;;  %v2076_v38 = vpack.c.bf16 %v236_v35, %v229_v34  ;;  %v250_v45 = vand.u32 4294901760, %v249_v43  ;;  %v263_v2 = vsub.f32 %v2585_v50, %v3123_v53  ;;  %v3121_v11 = vand.u32 4294901760, %v2590_v55 }
  0x4d   :  { %2057 = vmatprep.subr.bf16.mxu0 %v2465_v0  ;;  %v257_v4 = vand.u32 4294901760, %v256_v1  ;;  %v270_v13 = vsub.f32 %v2587_v52, %v3122_v10  ;;  %v3120_v26 = vand.u32 4294901760, %v2596_v57  ;;  %v3119_v32 = vand.u32 4294901760, %v2598_v58 }
  0x4e   :  { %v2079_v54 = vpack.c.bf16 %v250_v45, %v243_v44  ;;  %v264_v5 = vand.u32 4294901760, %v263_v2  ;;  %v277_v18 = vsub.f32 %v2590_v55, %v3121_v11  ;;  %v2091_v45 = vpack.c.bf16 %v2558_v21, %v2556_v20 }
  0x4f   :  { %v271_v24 = vand.u32 4294901760, %v270_v13  ;;  %v284_v34 = vsub.f32 %v2596_v57, %v3120_v26  ;;  %v291_v35 = vsub.f32 %v2598_v58, %v3119_v32  ;;  %v2094_v1 = vpack.c.bf16 %v2562_v23, %v2560_v22 }
  0x50   :  { %2059 = vmatpush3.bf16.msra.mxu0 %v2601_v59  ;;  %v2082_v12 = vpack.c.bf16 %v264_v5, %v257_v4  ;;  %v278_v25 = vand.u32 4294901760, %v277_v18  ;;  %v2097_v2 = vpack.c.bf16 %v2567_v28, %v2565_v27  ;;  %v2100_v4 = vpack.c.bf16 %v2574_v42, %v2572_v41 }
  0x51   :  { %2060 = vmatprep.subr.bf16.mxu0 %v2465_v0  ;;  %v285_v39 = vand.u32 4294901760, %v284_v34  ;;  %v292_v43 = vand.u32 4294901760, %v291_v35  ;;  %v2103_v5 = vpack.c.bf16 %v2580_v48, %v2578_v47  ;;  %v2106_v13 = vpack.c.bf16 %v2585_v50, %v2583_v49 }
  0x52   :  { %v2085_v33 = vpack.c.bf16 %v278_v25, %v271_v24  ;;  %v2109_v18 = vpack.c.bf16 %v2590_v55, %v2587_v52  ;;  %v2112_v24 = vpack.c.bf16 %v2598_v58, %v2596_v57  ;;  %v3140_v20 = vand.u32 4294901760, %v2565_v27 }
  0x53   :  { %v2088_v44 = vpack.c.bf16 %v292_v43, %v285_v39  ;;  %v60_v43 = vld [vmem:[%s3114_s1] sm:$0x3]  ;;  %v3141_v21 = vand.u32 4294901760, %v2567_v28  ;;  %v3146_v27 = vand.u32 4294901760, %v2583_v49  ;;  %v3147_v28 = vand.u32 4294901760, %v2585_v50  ;;  %v748_v50 = vld [vmem:[#allocation7 + $0x68] sm:$0xff] }
  0x54   :  { %2062 = vmatpush3.bf16.msra.mxu0 %v2605_v60 }
  0x55   :  { %2063 = vmatprep.subr.bf16.mxu0 %v2465_v0 }
  0x58   :  { %2065 = vmatpush3.bf16.msra.mxu0 %v2609_v61 }
  0x59   :  { %2066 = vmatprep.subr.bf16.mxu0 %v2465_v0 }
  0xd2   :  { %v67_v25 = vpop.xlane.xlu0 %66 }
  0xd3   :  { %v68_v34 = vmul.f32 0.125, %v67_v25 }
  0xd5   :  { %v69_v35 = vmul.f32 %v68_v34, %v2543_v3 }
  0xd7   :  { %v70_v39 = vadd.f32 1.0, %v69_v35 }
  0xd9   :  { %2362 = vrcp.f32 %v70_v39 }
  0xda   :  { %2364 = vrsqrt.f32 %v70_v39 }
  0xe3   :  { %v2363_v32 = vpop.eup %2362 }
  0xe4   :  { %v2365_v26 = vpop.eup %2364  ;;  %v2704_v11 = vmul.f32 %v2363_v32, %v60_v43 }
  0xe5   :  { %v2707_v10 = vmul.f32 %v2365_v26, %v2543_v3  ;;  %v735_v3 = vld [vmem:[#allocation7] sm:$0xff]  ;;  %v740_v26 = vld [vmem:[#allocation7 + $0x28] sm:$0xff] }
  0xe7   :  { %v74_v53 = vmul.f32 %v2707_v10, %v60_v43  ;;  %v741_v43 = vld [vmem:[#allocation7 + $0x30] sm:$0xff] }
  0xe9   :  { %v2710_v51 = vand.u32 4294901760, %v74_v53 }
  0xeb   :  { %v2713_v25 = vsub.f32 %v74_v53, %v2710_v51  ;;  %v738_v53 = vld [vmem:[#allocation7 + $0x18] sm:$0xff] }
  0xec   :  { %v768_v32 = vand.u32 4294901760, %v738_v53 }
  0xed   :  { %v174_v34 = vand.u32 4294901760, %v2713_v25 }
  0xee   :  { %v2746_v15 = vsub.f32 %v738_v53, %v768_v32 }
  0xef   :  { %v175_v35 = vsub.f32 %v2713_v25, %v174_v34 }
  0xf1   :  { %v176_v39 = vand.u32 4294901760, %v175_v35  ;;  %v742_v35 = vld [vmem:[#allocation7 + $0x38] sm:$0xff] }
  0xf3   :  { %1655 = vmatmul.mubr.f32.vlgmr.msra.gmra.mrb[0].mxu0 %v176_v39  ;;  %v743_v39 = vld [vmem:[#allocation7 + $0x40] sm:$0xff] }
  0xf4   :  { %2068 = vmatpush3.bf16.msra.mxu0 %v2624_v8  ;;  %1689 = vmatprep.mubr.msk.f32.mxu0 %vm2466_vm1, %v2467_v56  ;;  %v736_v8 = vld [vmem:[#allocation7 + $0x8] sm:$0xff] }
  0xf5   :  { %2069 = vmatprep.subr.bf16.mxu0 %v2465_v0 }
  0xf8   :  { %2071 = vmatpush3.bf16.msra.mxu0 %v2634_v17  ;;  %v737_v17 = vld [vmem:[#allocation7 + $0x10] sm:$0xff] }
  0xf9   :  { %2072 = vmatprep.subr.bf16.mxu0 %v2465_v0 }
  0xfc   :  { %2074 = vmatpush3.bf16.msra.mxu0 %v2644_v31  ;;  %v759_v31 = vand.u32 4294901760, %v735_v3 }
  0xfd   :  { %2075 = vmatprep.subr.bf16.mxu0 %v2465_v0 }
 0x100   :  { %2077 = vmatpush3.bf16.msra.mxu0 %v2076_v38  ;;  %v762_v38 = vand.u32 4294901760, %v736_v8 }
 0x101   :  { %2078 = vmatprep.subr.bf16.mxu0 %v2465_v0 }
 0x102   :  { %v2736_v37 = vpack.c.bf16 %v762_v38, %v759_v31  ;;  %v2740_v36 = vsub.f32 %v736_v8, %v762_v38  ;;  %v780_v8 = vand.u32 4294901760, %v742_v35 }
 0x104   :  { %2080 = vmatpush3.bf16.msra.mxu0 %v2079_v54  ;;  %v765_v54 = vand.u32 4294901760, %v737_v17  ;;  %2188 = vmatpush3.bf16.msra.mxu1 %v2736_v37  ;;  %v2760_v53 = vsub.f32 %v742_v35, %v780_v8 }
 0x105   :  { %2081 = vmatprep.subr.bf16.mxu0 %v2465_v0  ;;  %2189 = vmatprep.subr.bf16.mxu1 %v2465_v0 }
 0x106   :  { %v2742_v30 = vsub.f32 %v737_v17, %v765_v54  ;;  %v2744_v16 = vpack.c.bf16 %v768_v32, %v765_v54  ;;  %v786_v17 = vand.u32 4294901760, %v744_v29 }
 0x108   :  { %2083 = vmatpush3.bf16.msra.mxu0 %v2082_v12  ;;  %v739_v12 = vld [vmem:[#allocation7 + $0x20] sm:$0xff]  ;;  %2191 = vmatpush3.bf16.msra.mxu1 %v2744_v16 }
 0x109   :  { %2084 = vmatprep.subr.bf16.mxu0 %v2465_v0  ;;  %2192 = vmatprep.subr.bf16.mxu1 %v2465_v0 }
 0x10c   :  { %2086 = vmatpush3.bf16.msra.mxu0 %v2085_v33  ;;  %v771_v33 = vand.u32 4294901760, %v739_v12 }
 0x10d   :  { %2087 = vmatprep.subr.bf16.mxu0 %v2465_v0 }
 0x10e   :  { %v2748_v7 = vsub.f32 %v739_v12, %v771_v33  ;;  %v2764_v12 = vsub.f32 %v744_v29, %v786_v17 }
 0x110   :  { %2089 = vmatpush3.bf16.msra.mxu0 %v2088_v44  ;;  %v774_v44 = vand.u32 4294901760, %v740_v26 }
 0x111   :  { %2090 = vmatprep.subr.bf16.mxu0 %v2465_v0 }
 0x112   :  { %v2754_v6 = vsub.f32 %v740_v26, %v774_v44  ;;  %v2154_v26 = vpack.c.bf16 %v3147_v28, %v3146_v27 }
 0x113   :  { %1690 = vmatmul.mubr.f32.vlgmr.msra.gmra.mrb[0].mxu0 %v2710_v51 }
 0x114   :  { %2092 = vmatpush3.bf16.msra.mxu0 %v2091_v45  ;;  %1724 = vmatprep.mubr.msk.f32.mxu0 %vm2466_vm1, %v2467_v56  ;;  %v2738_v45 = vsub.f32 %v735_v3, %v759_v31  ;;  %v777_v3 = vand.u32 4294901760, %v741_v43  ;;  %v783_v31 = vand.u32 4294901760, %v743_v39 }
 0x115   :  { %2093 = vmatprep.subr.bf16.mxu0 %v2465_v0 }
 0x116   :  { %v2758_v38 = vsub.f32 %v741_v43, %v777_v3  ;;  %v2762_v54 = vsub.f32 %v743_v39, %v783_v31  ;;  %v2778_v29 = vpack.c.bf16 %v780_v8, %v777_v3  ;;  %v852_v39 = vand.u32 4294901760, %v2738_v45 }
 0x117   :  { %v859_v3 = vand.u32 4294901760, %v2740_v36 }
 0x118   :  { %2095 = vmatpush3.bf16.msra.mxu0 %v2094_v1  ;;  %v2770_v1 = vpack.c.bf16 %v774_v44, %v771_v33 }
 0x119   :  { %2096 = vmatprep.subr.bf16.mxu0 %v2465_v0 }
 0x11a   :  { %2194 = vmatpush3.bf16.msra.mxu1 %v2770_v1 }
 0x11b   :  { %2195 = vmatprep.subr.bf16.mxu1 %v2465_v0 }
 0x11c   :  { %2098 = vmatpush3.bf16.msra.mxu0 %v2097_v2  ;;  %v2786_v2 = vpack.c.bf16 %v786_v17, %v783_v31 }
 0x11d   :  { %2099 = vmatprep.subr.bf16.mxu0 %v2465_v0 }
 0x11e   :  { %2197 = vmatpush3.bf16.msra.mxu1 %v2778_v29 }
 0x11f   :  { %2198 = vmatprep.subr.bf16.mxu1 %v2465_v0 }
 0x120   :  { %2101 = vmatpush3.bf16.msra.mxu0 %v2100_v4  ;;  %v2139_v4 = vpack.c.bf16 %v192_v63, %v185_v62  ;;  %v2145_v62 = vpack.c.bf16 %v3141_v21, %v3140_v20  ;;  %v3142_v63 = vand.u32 4294901760, %v2572_v41  ;;  %v3148_v41 = vand.u32 4294901760, %v2587_v52 }
 0x121   :  { %2102 = vmatprep.subr.bf16.mxu0 %v2465_v0  ;;  %v873_v20 = vand.u32 4294901760, %v2746_v15 }
 0x122   :  { %2200 = vmatpush3.bf16.msra.mxu1 %v2786_v2 }
 0x123   :  { %2201 = vmatprep.subr.bf16.mxu1 %v2465_v0 }
 0x124   :  { %2104 = vmatpush3.bf16.msra.mxu0 %v2103_v5  ;;  %v3138_v5 = vand.u32 4294901760, %v2560_v22  ;;  %v3143_v22 = vand.u32 4294901760, %v2574_v42  ;;  %v3149_v42 = vand.u32 4294901760, %v2590_v55  ;;  %v798_v55 = vand.u32 4294901760, %v748_v50 }
 0x125   :  { %2105 = vmatprep.subr.bf16.mxu0 %v2465_v0 }
 0x126   :  { %v2157_v32 = vpack.c.bf16 %v3149_v42, %v3148_v41  ;;  %v2899_v44 = vsub.f32 %v748_v50, %v798_v55 }
 0x128   :  { %2107 = vmatpush3.bf16.msra.mxu0 %v2106_v13  ;;  %v3139_v13 = vand.u32 4294901760, %v2562_v23  ;;  %v2148_v23 = vpack.c.bf16 %v3143_v22, %v3142_v63  ;;  %v874_v63 = vsub.f32 %v2746_v15, %v873_v20 }
 0x129   :  { %2108 = vmatprep.subr.bf16.mxu0 %v2465_v0 }
 0x12c   :  { %2110 = vmatpush3.bf16.msra.mxu0 %v2109_v18  ;;  %v2142_v18 = vpack.c.bf16 %v3139_v13, %v3138_v5  ;;  %v860_v5 = vsub.f32 %v2740_v36, %v859_v3 }
 0x12d   :  { %2111 = vmatprep.subr.bf16.mxu0 %v2465_v0 }
 0x12e   :  { %v861_v21 = vand.u32 4294901760, %v860_v5 }
 0x130   :  { %2113 = vmatpush3.bf16.msra.mxu0 %v2112_v24  ;;  %v3144_v24 = vand.u32 4294901760, %v2578_v47  ;;  %v3150_v47 = vand.u32 4294901760, %v2596_v57 }
 0x131   :  { %2114 = vmatprep.subr.bf16.mxu0 %v2465_v0 }
 0x133   :  { %1725 = vmatmul.mubr.f32.vlgmr.msra.gmra.mrb[0].mxu0 %v2713_v25  ;;  %v3145_v25 = vand.u32 4294901760, %v2580_v48  ;;  %v3151_v48 = vand.u32 4294901760, %v2598_v58  ;;  %v749_v58 = vld [vmem:[#allocation7 + $0x70] sm:$0xff] }
 0x134   :  { %2116 = vmatpush3.bf16.msra.mxu0 %v2546_v9  ;;  %1759 = vmatprep.mubr.msk.f32.mxu0 %vm2466_vm1, %v2467_v56  ;;  %v801_v43 = vand.u32 4294901760, %v749_v58 }
 0x135   :  { %2117 = vmatprep.subr.bf16.mxu0 %v2465_v0  ;;  %v2160_v33 = vpack.c.bf16 %v3151_v48, %v3150_v47  ;;  %v901_v47 = vand.u32 4294901760, %v2760_v53 }
 0x136   :  { %v2906_v31 = vsub.f32 %v749_v58, %v801_v43 }
 0x138   :  { %2119 = vmatpush3.bf16.msra.mxu0 %v2550_v14 }
 0x139   :  { %2120 = vmatprep.subr.bf16.mxu0 %v2465_v0 }
 0x13c   :  { %2122 = vmatpush3.bf16.msra.mxu0 %v2554_v19 }
 0x13d   :  { %2123 = vmatprep.subr.bf16.mxu0 %v2465_v0 }
 0x140   :  { %2125 = vmatpush3.bf16.msra.mxu0 %v2570_v40 }
 0x141   :  { %2126 = vmatprep.subr.bf16.mxu0 %v2465_v0 }
 0x144   :  { %2128 = vmatpush3.bf16.msra.mxu0 %v2576_v46 }
 0x145   :  { %2129 = vmatprep.subr.bf16.mxu0 %v2465_v0 }
 0x148   :  { %2131 = vmatpush3.bf16.msra.mxu0 %v2601_v59 }
 0x149   :  { %2132 = vmatprep.subr.bf16.mxu0 %v2465_v0 }
 0x14c   :  { %2134 = vmatpush3.bf16.msra.mxu0 %v2605_v60 }
 0x14d   :  { %2135 = vmatprep.subr.bf16.mxu0 %v2465_v0 }
 0x150   :  { %2137 = vmatpush3.bf16.msra.mxu0 %v2609_v61 }
 0x151   :  { %2138 = vmatprep.subr.bf16.mxu0 %v2465_v0 }
 0x153   :  { %1760 = vmatmul.mubr.f32.vlgmr.msra.gmra.mrb[0].mxu0 %v174_v34  ;;  %v2151_v34 = vpack.c.bf16 %v3145_v25, %v3144_v24  ;;  %v875_v24 = vand.u32 4294901760, %v874_v63  ;;  %v880_v25 = vand.u32 4294901760, %v2748_v7 }
 0x154   :  { %2140 = vmatpush3.bf16.msra.mxu0 %v2139_v4  ;;  %1794 = vmatprep.mubr.msk.f32.mxu0 %vm2466_vm1, %v2467_v56  ;;  %v853_v4 = vsub.f32 %v2738_v45, %v852_v39 }
 0x155   :  { %2141 = vmatprep.subr.bf16.mxu0 %v2465_v0  ;;  %v881_v28 = vsub.f32 %v2748_v7, %v880_v25 }
 0x156   :  { %v854_v13 = vand.u32 4294901760, %v853_v4 }
 0x157   :  { %v882_v41 = vand.u32 4294901760, %v881_v28 }
 0x158   :  { %2143 = vmatpush3.bf16.msra.mxu0 %v2142_v18  ;;  %v866_v18 = vand.u32 4294901760, %v2742_v30  ;;  %v2926_v22 = vpack.c.bf16 %v861_v21, %v854_v13 }
 0x159   :  { %2144 = vmatprep.subr.bf16.mxu0 %v2465_v0 }
 0x15c   :  { %2146 = vmatpush3.bf16.msra.mxu0 %v2145_v62  ;;  %v867_v62 = vsub.f32 %v2742_v30, %v866_v18 }
 0x15d   :  { %2147 = vmatprep.subr.bf16.mxu0 %v2465_v0 }
 0x160   :  { %2149 = vmatpush3.bf16.msra.mxu0 %v2148_v23  ;;  %v868_v23 = vand.u32 4294901760, %v867_v62 }
 0x161   :  { %2150 = vmatprep.subr.bf16.mxu0 %v2465_v0 }
 0x162   :  { %v2214_v27 = vpack.c.bf16 %v875_v24, %v868_v23  ;;  %v3135_v23 = vand.u32 4294901760, %v2899_v44 }
 0x164   :  { %2152 = vmatpush3.bf16.msra.mxu0 %v2151_v34  ;;  %v887_v34 = vand.u32 4294901760, %v2754_v6 }
 0x165   :  { %2153 = vmatprep.subr.bf16.mxu0 %v2465_v0 }
 0x168   :  { %2155 = vmatpush3.bf16.msra.mxu0 %v2154_v26  ;;  %v888_v26 = vsub.f32 %v2754_v6, %v887_v34 }
 0x169   :  { %2156 = vmatprep.subr.bf16.mxu0 %v2465_v0 }
 0x16a   :  { %v889_v42 = vand.u32 4294901760, %v888_v26  ;;  %v944_v26 = vsub.f32 %v2899_v44, %v3135_v23 }
 0x16c   :  { %2158 = vmatpush3.bf16.msra.mxu0 %v2157_v32  ;;  %v894_v32 = vand.u32 4294901760, %v2758_v38  ;;  %v2217_v48 = vpack.c.bf16 %v889_v42, %v882_v41  ;;  %v945_v42 = vand.u32 4294901760, %v944_v26 }
 0x16d   :  { %2159 = vmatprep.subr.bf16.mxu0 %v2465_v0 }
 0x170   :  { %2161 = vmatpush3.bf16.msra.mxu0 %v2160_v33  ;;  %v895_v33 = vsub.f32 %v2758_v38, %v894_v32 }
 0x171   :  { %2162 = vmatprep.subr.bf16.mxu0 %v2465_v0 }
 0x173   :  { %1795 = vmatmul.mubr.f32.vlgmr.msra.gmra.mrb[0].mxu0 %v2710_v51 }
 0x174   :  { %2164 = vmatpush3.bf16.msra.mxu0 %v2546_v9  ;;  %1829 = vmatprep.mubr.msk.f32.mxu0 %vm2466_vm1, %v2467_v56  ;;  %v745_v9 = vld [vmem:[#allocation7 + $0x50] sm:$0xff] }
 0x175   :  { %2165 = vmatprep.subr.bf16.mxu0 %v2465_v0 }
 0x178   :  { %2167 = vmatpush3.bf16.msra.mxu0 %v2550_v14  ;;  %v746_v14 = vld [vmem:[#allocation7 + $0x58] sm:$0xff] }
 0x179   :  { %2168 = vmatprep.subr.bf16.mxu0 %v2465_v0 }
 0x17c   :  { %2170 = vmatpush3.bf16.msra.mxu0 %v2554_v19  ;;  %v789_v19 = vand.u32 4294901760, %v745_v9 }
 0x17d   :  { %2171 = vmatprep.subr.bf16.mxu0 %v2465_v0 }
 0x180   :  { %2173 = vmatpush3.bf16.msra.mxu0 %v2570_v40  ;;  %v792_v40 = vand.u32 4294901760, %v746_v14 }
 0x181   :  { %2174 = vmatprep.subr.bf16.mxu0 %v2465_v0 }
 0x182   :  { %v2886_v49 = vpack.c.bf16 %v792_v40, %v789_v19 }
 0x184   :  { %2176 = vmatpush3.bf16.msra.mxu0 %v2576_v46  ;;  %v747_v46 = vld [vmem:[#allocation7 + $0x60] sm:$0xff]  ;;  %2203 = vmatpush3.bf16.msra.mxu1 %v2886_v49 }
 0x185   :  { %2177 = vmatprep.subr.bf16.mxu0 %v2465_v0  ;;  %v795_v52 = vand.u32 4294901760, %v747_v46  ;;  %2204 = vmatprep.subr.bf16.mxu1 %v2465_v0 }
 0x187   :  { %v2890_v57 = vpack.c.bf16 %v798_v55, %v795_v52 }
 0x188   :  { %2179 = vmatpush3.bf16.msra.mxu0 %v2601_v59  ;;  %v750_v59 = vld [vmem:[#allocation7 + $0x78] sm:$0xff] }
 0x189   :  { %2180 = vmatprep.subr.bf16.mxu0 %v2465_v0  ;;  %2206 = vmatpush3.bf16.msra.mxu1 %v2890_v57  ;;  %v804_v35 = vand.u32 4294901760, %v750_v59 }
 0x18a   :  { %2207 = vmatprep.subr.bf16.mxu1 %v2465_v0 }
 0x18b   :  { %v2904_v8 = vpack.c.bf16 %v804_v35, %v801_v43  ;;  %v2908_v17 = vsub.f32 %v750_v59, %v804_v35 }
 0x18c   :  { %2182 = vmatpush3.bf16.msra.mxu0 %v2605_v60  ;;  %v2892_v60 = vsub.f32 %v745_v9, %v789_v19  ;;  %v902_v9 = vsub.f32 %v2760_v53, %v901_v47 }
 0x18d   :  { %2183 = vmatprep.subr.bf16.mxu0 %v2465_v0  ;;  %2209 = vmatpush3.bf16.msra.mxu1 %v2904_v8 }
 0x18e   :  { %2210 = vmatprep.subr.bf16.mxu1 %v2465_v0  ;;  %v903_v19 = vand.u32 4294901760, %v902_v9  ;;  %v922_v43 = vand.u32 4294901760, %v2892_v60  ;;  %v3133_v9 = vand.u32 4294901760, %v2908_v17 }
 0x190   :  { %2185 = vmatpush3.bf16.msra.mxu0 %v2609_v61  ;;  %v2894_v61 = vsub.f32 %v746_v14, %v792_v40  ;;  %v896_v14 = vand.u32 4294901760, %v895_v33  ;;  %v908_v40 = vand.u32 4294901760, %v2762_v54  ;;  %v923_v5 = vsub.f32 %v2892_v60, %v922_v43 }
 0x191   :  { %v3134_v33 = vand.u32 4294901760, %v2906_v31 }
 0x192   :  { %v2220_v50 = vpack.c.bf16 %v903_v19, %v896_v14  ;;  %v3137_v35 = vand.u32 4294901760, %v2894_v61  ;;  %v924_v21 = vand.u32 4294901760, %v923_v5  ;;  %v2235_v5 = vpack.c.bf16 %v2740_v36, %v2738_v45 }
 0x193   :  { %1830 = vmatmul.mubr.f32.vlgmr.msra.gmra.mrb[0].mxu0 %v2710_v51  ;;  %v2897_v51 = vsub.f32 %v747_v46, %v795_v52  ;;  %v915_v46 = vand.u32 4294901760, %v2764_v12  ;;  %v909_v52 = vsub.f32 %v2762_v54, %v908_v40  ;;  %v951_v19 = vsub.f32 %v2906_v31, %v3134_v33 }
 0x194   :  { %v930_v13 = vsub.f32 %v2894_v61, %v3137_v35  ;;  %v2250_v26 = vpack.c.bf16 %v2894_v61, %v2892_v60  ;;  %v2289_v36 = vpack.c.bf16 %v887_v34, %v880_v25 }
 0x195   :  { %v916_v55 = vsub.f32 %v2764_v12, %v915_v46  ;;  %v910_v58 = vand.u32 4294901760, %v909_v52  ;;  %v3136_v63 = vand.u32 4294901760, %v2897_v51  ;;  %v958_v52 = vsub.f32 %v2908_v17, %v3133_v9 }
 0x196   :  { %v931_v62 = vand.u32 4294901760, %v930_v13  ;;  %v2238_v13 = vpack.c.bf16 %v2746_v15, %v2742_v30  ;;  %v2292_v15 = vpack.c.bf16 %v901_v47, %v894_v32  ;;  %v2295_v30 = vpack.c.bf16 %v915_v46, %v908_v40 }
 0x197   :  { %v917_v59 = vand.u32 4294901760, %v916_v55  ;;  %v937_v28 = vsub.f32 %v2897_v51, %v3136_v63  ;;  %v952_v55 = vand.u32 4294901760, %v951_v19  ;;  %v3153_v45 = vand.u32 4294901760, %v2897_v51 }
 0x198   :  { %v2226_v24 = vpack.c.bf16 %v931_v62, %v924_v21  ;;  %v2241_v21 = vpack.c.bf16 %v2754_v6, %v2748_v7  ;;  %v2244_v62 = vpack.c.bf16 %v2760_v53, %v2758_v38  ;;  %v3152_v6 = vand.u32 4294901760, %v2894_v61 }
 0x199   :  { %v2223_v4 = vpack.c.bf16 %v917_v59, %v910_v58  ;;  %v938_v41 = vand.u32 4294901760, %v937_v28  ;;  %v959_v58 = vand.u32 4294901760, %v958_v52  ;;  %v2247_v28 = vpack.c.bf16 %v2764_v12, %v2762_v54 }
 0x19a   :  { %v2298_v7 = vpack.c.bf16 %v3152_v6, %v922_v43  ;;  %v3154_v38 = vand.u32 4294901760, %v2899_v44  ;;  %v3155_v54 = vand.u32 4294901760, %v2906_v31  ;;  %v3156_v12 = vand.u32 4294901760, %v2908_v17 }
 0x19b   :  { %v2229_v14 = vpack.c.bf16 %v945_v42, %v938_v41  ;;  %v2232_v59 = vpack.c.bf16 %v959_v58, %v952_v55  ;;  %v2253_v41 = vpack.c.bf16 %v2899_v44, %v2897_v51  ;;  %v2256_v42 = vpack.c.bf16 %v2908_v17, %v2906_v31 }
 0x19c   :  { %v2301_v53 = vpack.c.bf16 %v3154_v38, %v3153_v45 }
 0x266   :  { %v728_v19 = vpop.f32.mrb[0].mxu0 }
 0x267   :  { %v732_v52 = vmul.f32 %v728_v19, %v2707_v10  ;;  %v1831_v55 = vpop.f32.mrb[1].mxu0  ;;  %v2283_v10 = vpack.c.bf16 %v859_v3, %v852_v39  ;;  %v2304_v39 = vpack.c.bf16 %v3156_v12, %v3155_v54 }
 0x269   :  { %v734_v58 = vadd.f32 %v2704_v11, %v732_v52  ;;  %v2286_v11 = vpack.c.bf16 %v873_v20, %v866_v18 }
 0x26b   :  { %v2994_v9 = vand.u32 4294901760, %v734_v58 }
 0x26d   :  { %v840_v33 = vsub.f32 %v734_v58, %v2994_v9 }
 0x26f   :  { %v841_v23 = vand.u32 4294901760, %v840_v33 }
 0x271   :  { %v842_v63 = vsub.f32 %v840_v33, %v841_v23 }
 0x273   :  { %v843_v35 = vand.u32 4294901760, %v842_v63 }
 0x275   :  { %1865 = vmatmul.mubr.f32.vlgmr.msra.gmra.mrb[0].mxu1 %v843_v35 }
 0x276   :  { %2212 = vmatpush3.bf16.msra.mxu1 %v2926_v22  ;;  %1899 = vmatprep.mubr.msk.f32.mxu1 %vm2466_vm1, %v2467_v56 }
 0x277   :  { %2213 = vmatprep.subr.bf16.mxu1 %v2465_v0 }
 0x27a   :  { %2215 = vmatpush3.bf16.msra.mxu1 %v2214_v27 }
 0x27b   :  { %2216 = vmatprep.subr.bf16.mxu1 %v2465_v0 }
 0x27e   :  { %2218 = vmatpush3.bf16.msra.mxu1 %v2217_v48 }
 0x27f   :  { %2219 = vmatprep.subr.bf16.mxu1 %v2465_v0 }
 0x282   :  { %2221 = vmatpush3.bf16.msra.mxu1 %v2220_v50 }
 0x283   :  { %2222 = vmatprep.subr.bf16.mxu1 %v2465_v0 }
 0x286   :  { %2224 = vmatpush3.bf16.msra.mxu1 %v2223_v4 }
 0x287   :  { %2225 = vmatprep.subr.bf16.mxu1 %v2465_v0 }
 0x28a   :  { %2227 = vmatpush3.bf16.msra.mxu1 %v2226_v24 }
 0x28b   :  { %2228 = vmatprep.subr.bf16.mxu1 %v2465_v0 }
 0x28e   :  { %2230 = vmatpush3.bf16.msra.mxu1 %v2229_v14 }
 0x28f   :  { %2231 = vmatprep.subr.bf16.mxu1 %v2465_v0 }
 0x292   :  { %2233 = vmatpush3.bf16.msra.mxu1 %v2232_v59 }
 0x293   :  { %2234 = vmatprep.subr.bf16.mxu1 %v2465_v0 }
 0x295   :  { %1900 = vmatmul.mubr.f32.vlgmr.msra.gmra.mrb[0].mxu1 %v2994_v9 }
 0x296   :  { %2236 = vmatpush3.bf16.msra.mxu1 %v2235_v5  ;;  %1934 = vmatprep.mubr.msk.f32.mxu1 %vm2466_vm1, %v2467_v56 }
 0x297   :  { %2237 = vmatprep.subr.bf16.mxu1 %v2465_v0 }
 0x29a   :  { %2239 = vmatpush3.bf16.msra.mxu1 %v2238_v13 }
 0x29b   :  { %2240 = vmatprep.subr.bf16.mxu1 %v2465_v0 }
 0x29e   :  { %2242 = vmatpush3.bf16.msra.mxu1 %v2241_v21 }
 0x29f   :  { %2243 = vmatprep.subr.bf16.mxu1 %v2465_v0 }
 0x2a2   :  { %2245 = vmatpush3.bf16.msra.mxu1 %v2244_v62 }
 0x2a3   :  { %2246 = vmatprep.subr.bf16.mxu1 %v2465_v0 }
 0x2a6   :  { %2248 = vmatpush3.bf16.msra.mxu1 %v2247_v28 }
 0x2a7   :  { %2249 = vmatprep.subr.bf16.mxu1 %v2465_v0 }
 0x2aa   :  { %2251 = vmatpush3.bf16.msra.mxu1 %v2250_v26 }
 0x2ab   :  { %2252 = vmatprep.subr.bf16.mxu1 %v2465_v0 }
 0x2ae   :  { %2254 = vmatpush3.bf16.msra.mxu1 %v2253_v41 }
 0x2af   :  { %2255 = vmatprep.subr.bf16.mxu1 %v2465_v0 }
 0x2b2   :  { %2257 = vmatpush3.bf16.msra.mxu1 %v2256_v42 }
 0x2b3   :  { %2258 = vmatprep.subr.bf16.mxu1 %v2465_v0 }
 0x2b5   :  { %1935 = vmatmul.mubr.f32.vlgmr.msra.gmra.mrb[0].mxu1 %v840_v33 }
 0x2b6   :  { %2260 = vmatpush3.bf16.msra.mxu1 %v2736_v37  ;;  %1969 = vmatprep.mubr.msk.f32.mxu1 %vm2466_vm1, %v2467_v56 }
 0x2b7   :  { %2261 = vmatprep.subr.bf16.mxu1 %v2465_v0 }
 0x2ba   :  { %2263 = vmatpush3.bf16.msra.mxu1 %v2744_v16 }
 0x2bb   :  { %2264 = vmatprep.subr.bf16.mxu1 %v2465_v0 }
 0x2be   :  { %2266 = vmatpush3.bf16.msra.mxu1 %v2770_v1 }
 0x2bf   :  { %2267 = vmatprep.subr.bf16.mxu1 %v2465_v0 }
 0x2c2   :  { %2269 = vmatpush3.bf16.msra.mxu1 %v2778_v29 }
 0x2c3   :  { %2270 = vmatprep.subr.bf16.mxu1 %v2465_v0 }
 0x2c6   :  { %2272 = vmatpush3.bf16.msra.mxu1 %v2786_v2 }
 0x2c7   :  { %2273 = vmatprep.subr.bf16.mxu1 %v2465_v0 }
 0x2ca   :  { %2275 = vmatpush3.bf16.msra.mxu1 %v2886_v49 }
 0x2cb   :  { %2276 = vmatprep.subr.bf16.mxu1 %v2465_v0 }
 0x2ce   :  { %2278 = vmatpush3.bf16.msra.mxu1 %v2890_v57 }
 0x2cf   :  { %2279 = vmatprep.subr.bf16.mxu1 %v2465_v0 }
 0x2d2   :  { %2281 = vmatpush3.bf16.msra.mxu1 %v2904_v8 }
 0x2d3   :  { %2282 = vmatprep.subr.bf16.mxu1 %v2465_v0 }
 0x2d5   :  { %1970 = vmatmul.mubr.f32.vlgmr.msra.gmra.mrb[0].mxu1 %v841_v23 }
 0x2d6   :  { %2284 = vmatpush3.bf16.msra.mxu1 %v2283_v10  ;;  %2004 = vmatprep.mubr.msk.f32.mxu1 %vm2466_vm1, %v2467_v56 }
 0x2d7   :  { %2285 = vmatprep.subr.bf16.mxu1 %v2465_v0 }
 0x2da   :  { %2287 = vmatpush3.bf16.msra.mxu1 %v2286_v11 }
 0x2db   :  { %2288 = vmatprep.subr.bf16.mxu1 %v2465_v0 }
 0x2de   :  { %2290 = vmatpush3.bf16.msra.mxu1 %v2289_v36 }
 0x2df   :  { %2291 = vmatprep.subr.bf16.mxu1 %v2465_v0 }
 0x2e2   :  { %2293 = vmatpush3.bf16.msra.mxu1 %v2292_v15 }
 0x2e3   :  { %2294 = vmatprep.subr.bf16.mxu1 %v2465_v0 }
 0x2e6   :  { %2296 = vmatpush3.bf16.msra.mxu1 %v2295_v30 }
 0x2e7   :  { %2297 = vmatprep.subr.bf16.mxu1 %v2465_v0 }
 0x2ea   :  { %2299 = vmatpush3.bf16.msra.mxu1 %v2298_v7 }
 0x2eb   :  { %2300 = vmatprep.subr.bf16.mxu1 %v2465_v0 }
 0x2ee   :  { %2302 = vmatpush3.bf16.msra.mxu1 %v2301_v53 }
 0x2ef   :  { %2303 = vmatprep.subr.bf16.mxu1 %v2465_v0 }
 0x2f2   :  { %2305 = vmatpush3.bf16.msra.mxu1 %v2304_v39 }
 0x2f3   :  { %2306 = vmatprep.subr.bf16.mxu1 %v2465_v0 }
 0x2f5   :  { %2005 = vmatmul.mubr.f32.vlgmr.msra.gmra.mrb[0].mxu1 %v2994_v9 }
 0x2f6   :  { %2308 = vmatpush3.bf16.msra.mxu1 %v2736_v37  ;;  %2039 = vmatprep.mubr.msk.f32.mxu1 %vm2466_vm1, %v2467_v56  ;;  %v1417_v56 = vld [vmem:[%s3117_s4] ss:$0 sm:$0xff] }
 0x2f7   :  { %2309 = vmatprep.subr.bf16.mxu1 %v2465_v0 }
 0x2fa   :  { %2311 = vmatpush3.bf16.msra.mxu1 %v2744_v16 }
 0x2fb   :  { %2312 = vmatprep.subr.bf16.mxu1 %v2465_v0 }
 0x2fe   :  { %2314 = vmatpush3.bf16.msra.mxu1 %v2770_v1 }
 0x2ff   :  { %2315 = vmatprep.subr.bf16.mxu1 %v2465_v0 }
 0x302   :  { %2317 = vmatpush3.bf16.msra.mxu1 %v2778_v29 }
 0x303   :  { %2318 = vmatprep.subr.bf16.mxu1 %v2465_v0 }
 0x306   :  { %2320 = vmatpush3.bf16.msra.mxu1 %v2786_v2 }
 0x307   :  { %2321 = vmatprep.subr.bf16.mxu1 %v2465_v0 }
 0x30a   :  { %2323 = vmatpush3.bf16.msra.mxu1 %v2886_v49 }
 0x30b   :  { %2324 = vmatprep.subr.bf16.mxu1 %v2465_v0 }
 0x30e   :  { %2326 = vmatpush3.bf16.msra.mxu1 %v2890_v57 }
 0x30f   :  { %2327 = vmatprep.subr.bf16.mxu1 %v2465_v0 }
 0x312   :  { %2329 = vmatpush3.bf16.msra.mxu1 %v2904_v8 }
 0x315   :  { %2040 = vmatmul.mubr.f32.vlgmr.msra.gmra.mrb[0].mxu1 %v2994_v9 }
 0x3e8   :  { %v1395_v16 = vpop.f32.mrb[0].mxu1 }
 0x3e9   :  { %v2330_v37 = vadd.f32 %v1417_v56, %v1395_v16  ;;  %v2041_v1 = vpop.f32.mrb[1].mxu1 }
 0x3eb   :  { %v1399_v29 = vmax.f32 %v2330_v37, 0.0 }
 0x3ed   :  { %1400 = vst [vmem:[#allocation8] sm:$0x3] %v1399_v29 }
 0x3ee   :  { %2443 = shalt.err (!%p2440_p0)
}
 0x3ef   :  { %s2444_s11 = scalar_lea.hbm %s3118_s5, 32 }
 0x3f0   :  { %p2445_p1 = scmp.ne.s32.totalorder %s3118_s5, %s2444_s11  ;;  %p2448_p2 = scmp.lt.u32.totalorder %s2444_s11, %s3118_s5 }
 0x3f2   :  { %p2450_p3 = pnand %p2448_p2, %p2445_p1 }
 0x3f4   :  { %2453 = shalt.err (!%p2450_p3)
}
 0x3f5   :  { %1410 = dma.vmem_to_hbm [thread:$0]  %s1408_s7, 32, %s3118_s5, [#allocation4]  }
 0x3f6   :  { %2458 = dma.done.wait [#allocation4], 32  }
 0x3f7   :  { %2459 = vsyncadd [#allocation4], 4294967264 }
 0x3f8   :  { %1414 = vsyncpa [#allocation3], 1 }
 0x3f9   :  { %1415 = vsyncpa [#allocation6], 1 }
 0x3fa   :  { %1416 = vsyncpa [#allocation4], 1 }

</bundles_post_ra>
